<compile_context>
chip_gen: v5e
topology: v5e:2x2
jax: 0.10.0
libtpu: 0.0.40
codegen_flags: <defaults>
</compile_context>

<pallas_src>
import functools

import jax
import jax.numpy as jnp
from jax.experimental import pallas as pl
from jax.experimental.pallas import tpu as pltpu


def _vmem_capacity_bytes():
    """Physical VMEM bytes for the current chip; conservative 64 MiB fallback."""
    try:
        info = pltpu.get_tpu_info()
        cap = int(getattr(info, "vmem_capacity_bytes", 0) or 0)
        if cap > 0:
            return cap
    except Exception:
        pass
    return 64 * 1024 * 1024  # v7x floor; safe on every generation


def _int_pow(x, n):
    """x**n for a small positive integer n via repeated squaring (VPU only)."""
    assert n >= 1
    result = None
    base = x
    while n > 0:
        if n & 1:
            result = base if result is None else result * base
        n >>= 1
        if n:
            base = base * base
    return result


def _abs_pow(ad, p):
    """|d|^p with cheap special cases (avoid generic exp/log pow on the EUP)."""
    if p == 1.0:
        return ad
    if float(p).is_integer() and 2.0 <= p <= 8.0:
        return _int_pow(ad, int(p))
    if float(2.0 * p).is_integer() and 0.0 < p < 8.0:
        # p = k/2  ->  |d|^p = sqrt(|d|)^k   (one sqrt + VPU multiplies)
        return _int_pow(jnp.sqrt(ad), int(2.0 * p))
    return ad ** p


def _lp_root(s, p, inv_p):
    """s^(1/p) with cheap special cases (applied only to the (TB, 1) result)."""
    if p == 1.0:
        return s
    if p == 2.0:
        return jnp.sqrt(s)
    if p == 4.0:
        return jnp.sqrt(jnp.sqrt(s))
    if p == 0.5:
        return s * s
    return s ** inv_p


def _partial_lane_sums(ad, p):
    """(TB, TD) -> (TB, 128) per-128-lane partial sums of |d|^p.

    Static, lane-aligned slices of the last axis are plain vreg selections (no
    relayout), so this is pure VPU add work; the expensive cross-lane (XLU)
    reduce is deferred to the final grid step.
    """
    contrib = _abs_pow(ad, p)
    td = contrib.shape[1]
    s = contrib[:, 0:128]
    for j in range(1, td // 128):
        s = s + contrib[:, j * 128:(j + 1) * 128]
    return s


def _lp_norm_kernel_single(r_ref, t_ref, out_ref, *, p, inv_p):
    """Single-D-tile fast path: block last dim == D, no mask, no accumulator."""
    # TODO(synk): on v6e/v7x a bf16 elementwise path (f32 partial sums only)
    # would halve VALU work for bf16 inputs; kept f32 everywhere since v5e's
    # VPU has no bf16 ALUs and for exact parity with the reference.
    diff = t_ref[...].astype(jnp.float32) - r_ref[...].astype(jnp.float32)
    contrib = _abs_pow(jnp.abs(diff), p)
    s = jnp.sum(contrib, axis=1, keepdims=True)
    out_ref[...] = _lp_root(s, p, inv_p)


def _lp_norm_kernel_multi(r_ref, t_ref, out_ref, acc_ref, *,
                          p, inv_p, D, TD, needs_mask):
    """Multi-D-tile path.

    r_ref, t_ref : (TB, TD) tiles of the flattened inputs (native dtype)
    out_ref      : (TB, 1)  f32; written only on the last D step
    acc_ref      : (TB, 128) f32 VMEM scratch; per-128-lane running sums
    """
    k = pl.program_id(1)
    nk = pl.num_programs(1)

    @pl.when(k == 0)
    def _():
        acc_ref[...] = jnp.zeros_like(acc_ref)

    diff = t_ref[...].astype(jnp.float32) - r_ref[...].astype(jnp.float32)
    ad = jnp.abs(diff)

    if needs_mask:
        # Only the final (possibly partial) D tile needs the lane mask; gate the
        # iota/compare/select behind lax.cond so it is not paid on every step.
        # Keep the select (jnp.where), not a 0/1 multiply, so NaN/Inf garbage in
        # the padded lanes cannot propagate into the accumulator.
        def _masked(a):
            lane = jax.lax.broadcasted_iota(jnp.int32, a.shape, 1)
            a = jnp.where(k * TD + lane < D, a, 0.0)
            return _partial_lane_sums(a, p)

        def _plain(a):
            return _partial_lane_sums(a, p)

        partial = jax.lax.cond(k == nk - 1, _masked, _plain, ad)
    else:
        partial = _partial_lane_sums(ad, p)

    acc_ref[...] += partial

    @pl.when(k == nk - 1)
    def _():
        s = jnp.sum(acc_ref[...], axis=1, keepdims=True)
        out_ref[...] = _lp_root(s, p, inv_p)


def _choose_tiles(B, D, itemsize, budget_bytes, max_td=None):
    """Pick (TB, TD).

    TB: split the batch ("parallel") axis into >= 2 tiles whenever possible so
        v7x megacore can shard it across both TensorCores. Blocks on the
        second-to-last axis must be a multiple of 8 (or the full extent), so
        B <= 8 cannot be split.
    TD: largest multiple of 128 such that 2 inputs x 2 pipeline buffers of
        (TB, TD) stay within budget_bytes, capped at round_up(D, 128).
    """
    TB_MAX = 256
    if B <= 8:
        TB = B
    else:
        tb = -(-B // 2)               # cdiv(B, 2): aim for >= 2 batch tiles
        tb = ((tb + 7) // 8) * 8      # round up to sublane multiple
        TB = min(tb, TB_MAX)

    d_pad = ((D + 127) // 128) * 128
    lanes = budget_bytes // (2 * 2 * max(TB, 1) * itemsize)
    TD = max(128, (lanes // 128) * 128)
    if max_td is not None:
        TD = min(TD, max(128, (int(max_td) // 128) * 128))
    TD = min(TD, d_pad)
    return TB, TD


def lp_reconstruction_loss(reconstructions, targets, p=1.0, reduction="mean",
                           *, _max_td=None):
    """JAX/Pallas equivalent of LpReconstructionLoss.forward (float p > 0)."""
    assert reconstructions.shape == targets.shape, (
        f"reconstructions and targets did not have the same dimensions, "
        f"were {reconstructions.shape} and {targets.shape}."
    )
    reduction = reduction.lower()
    assert reduction in ("mean", "sum", "none")
    # TODO(synk): p == 0 (nonzero count), p == inf (max), and 'fro'/'nuc' string
    # orders are not implemented in this kernel.
    p = float(p)
    assert p > 0.0 and p != float("inf")

    B = reconstructions.shape[0]
    r = reconstructions.reshape(B, -1)
    t = targets.reshape(B, -1)
    D = r.shape[1]
    itemsize = max(jnp.dtype(r.dtype).itemsize, jnp.dtype(t.dtype).itemsize)

    # Generation-aware VMEM budget: 3/4 of physical VMEM as the compiler limit
    # (48 MiB on v7x, 96 MiB on v5e/v6e), half of that for the two
    # double-buffered input streams.
    vmem_cap = _vmem_capacity_bytes()
    vmem_limit = min((3 * vmem_cap) // 4, 96 * 1024 * 1024)
    budget_bytes = vmem_limit // 2

    TB, TD = _choose_tiles(B, D, itemsize, budget_bytes, _max_td)
    nb = pl.cdiv(B, TB)

    if TD >= D:
        # Fast path: D fits in one tile. Full-extent last dim (exempt from the
        # 128-divisibility rule) => no in-kernel mask, no accumulator.
        kernel = functools.partial(_lp_norm_kernel_single, p=p, inv_p=1.0 / p)
        norms = pl.pallas_call(
            kernel,
            out_shape=jax.ShapeDtypeStruct((B, 1), jnp.float32),
            grid_spec=pltpu.PrefetchScalarGridSpec(
                num_scalar_prefetch=0,
                grid=(nb,),
                in_specs=[
                    pl.BlockSpec((TB, D), lambda b: (b, 0)),
                    pl.BlockSpec((TB, D), lambda b: (b, 0)),
                ],
                out_specs=pl.BlockSpec((TB, 1), lambda b: (b, 0)),
            ),
            compiler_params=pltpu.CompilerParams(
                dimension_semantics=("parallel",),
                vmem_limit_bytes=vmem_limit,
            ),
        )(r, t)
    else:
        nk = pl.cdiv(D, TD)
        needs_mask = (D % TD) != 0
        kernel = functools.partial(
            _lp_norm_kernel_multi, p=p, inv_p=1.0 / p, D=D, TD=TD,
            needs_mask=needs_mask,
        )
        norms = pl.pallas_call(
            kernel,
            out_shape=jax.ShapeDtypeStruct((B, 1), jnp.float32),
            grid_spec=pltpu.PrefetchScalarGridSpec(
                num_scalar_prefetch=0,
                grid=(nb, nk),
                in_specs=[
                    pl.BlockSpec((TB, TD), lambda b, k: (b, k)),
                    pl.BlockSpec((TB, TD), lambda b, k: (b, k)),
                ],
                out_specs=pl.BlockSpec((TB, 1), lambda b, k: (b, 0)),
                scratch_shapes=[pltpu.VMEM((TB, 128), jnp.float32)],
            ),
            compiler_params=pltpu.CompilerParams(
                dimension_semantics=("parallel", "arbitrary"),
                vmem_limit_bytes=vmem_limit,
            ),
        )(r, t)

    norms = norms[:, 0]  # (B,)
    if reduction == "mean":
        return jnp.mean(norms)
    elif reduction == "sum":
        return jnp.sum(norms)
    else:
        return norms


def _reference(reconstructions, targets, p=1.0, reduction="mean"):
    B = reconstructions.shape[0]
    d = (
        targets.reshape(B, -1).astype(jnp.float32)
        - reconstructions.reshape(B, -1).astype(jnp.float32)
    )
    norms = jnp.sum(jnp.abs(d) ** p, axis=1) ** (1.0 / p)
    if reduction == "mean":
        return jnp.mean(norms)
    if reduction == "sum":
        return jnp.sum(norms)
    return norms


if __name__ == "__main__":
    key = jax.random.PRNGKey(0)
    k1, k2, k3, k4, k5, k6 = jax.random.split(key, 6)

    ok = True

    # 1) f32 inputs, D = 4*16*16 = 1024 -> single-D-tile fast path.
    shape = (2, 4, 16, 16)  # (B, C, H, W)
    recon = jax.random.normal(k1, shape, dtype=jnp.float32)
    target = jax.random.normal(k2, shape, dtype=jnp.float32)
    for p, reduction in [(1.0, "mean"), (2.0, "sum"), (1.5, "none"), (3.0, "mean")]:
        out = lp_reconstruction_loss(recon, target, p=p, reduction=reduction)
        out = jax.block_until_ready(out)
        ref = _reference(recon, target, p=p, reduction=reduction)
        ok = ok and bool(jnp.allclose(out, ref, rtol=1e-4, atol=1e-4))

    # 1b) same data, forced multi-D-tile (TD=128, D%TD==0 -> no mask path).
    out = lp_reconstruction_loss(recon, target, p=2.0, reduction="mean", _max_td=128)
    out = jax.block_until_ready(out)
    ref = _reference(recon, target, p=2.0, reduction="mean")
    ok = ok and bool(jnp.allclose(out, ref, rtol=1e-4, atol=1e-4))

    # 2) bf16 inputs with D = 3*7*5 = 105 (< 128): single-tile full-extent block.
    shape2 = (3, 3, 7, 5)
    recon2 = jax.random.normal(k3, shape2, dtype=jnp.float32).astype(jnp.bfloat16)
    target2 = jax.random.normal(k4, shape2, dtype=jnp.float32).astype(jnp.bfloat16)
    for p, reduction in [(1.0, "mean"), (2.0, "none")]:
        out = lp_reconstruction_loss(recon2, target2, p=p, reduction=reduction)
        out = jax.block_until_ready(out)
        ref = _reference(recon2, target2, p=p, reduction=reduction)
        ok = ok and bool(jnp.allclose(out, ref, rtol=1e-4, atol=1e-4))

    # 3) Multi-D-tile + ragged last tile + split batch axis (B=10 -> TB=8):
    #    exercises scratch accumulation, the gated lane mask, and batch padding.
    shape3 = (10, 4, 9, 9)  # D = 324, TD forced to 256 -> 2 ragged D tiles
    recon3 = jax.random.normal(k5, shape3, dtype=jnp.float32)
    target3 = jax.random.normal(k6, shape3, dtype=jnp.float32)
    for p, reduction in [(2.0, "mean"), (1.0, "none")]:
        out = lp_reconstruction_loss(recon3, target3, p=p, reduction=reduction,
                                     _max_td=256)
        out = jax.block_until_ready(out)
        ref = _reference(recon3, target3, p=p, reduction=reduction)
        ok = ok and bool(jnp.allclose(out, ref, rtol=1e-4, atol=1e-4))

    if ok:
        print("KERNEL_OK")
    else:
        raise SystemExit("mismatch vs reference")
</pallas_src>

<mosaic_0001>
module attributes {stable_mosaic.version = 11 : i64} {
  func.func @_lp_norm_kernel_single(%arg0: i32, %arg1: memref<2x1024xf32, #tpu.memory_space<vmem>>, %arg2: memref<2x1024xf32, #tpu.memory_space<vmem>>, %arg3: memref<2x1xf32, #tpu.memory_space<vmem>>) attributes {dimension_semantics = [#tpu.dimension_semantics<parallel>], iteration_bounds = array<i64: 1>, scalar_prefetch = 0 : i64, scratch_operands = 0 : i64, tpu.core_type = #tpu.core_type<tc>, window_params = [{transform_indices = @transform_0, window_bounds = array<i64: 2, 1024>}, {transform_indices = @transform_1, window_bounds = array<i64: 2, 1024>}, {transform_indices = @transform_2, window_bounds = array<i64: 2, 1>}]} {
    %c0 = arith.constant 0 : index
    %c0_0 = arith.constant 0 : index
    %0 = vector.load %arg2[%c0, %c0_0] : memref<2x1024xf32, #tpu.memory_space<vmem>>, vector<2x1024xf32>
    %c0_1 = arith.constant 0 : index
    %c0_2 = arith.constant 0 : index
    %1 = vector.load %arg1[%c0_1, %c0_2] : memref<2x1024xf32, #tpu.memory_space<vmem>>, vector<2x1024xf32>
    %2 = arith.subf %0, %1 : vector<2x1024xf32>
    %3 = math.absf %2 : vector<2x1024xf32>
    %cst = arith.constant dense<0.000000e+00> : vector<2xf32>
    %4 = vector.multi_reduction <add>, %3, %cst [1] : vector<2x1024xf32> to vector<2xf32>
    %5 = vector.shape_cast %4 : vector<2xf32> to vector<2x1xf32>
    %c0_3 = arith.constant 0 : index
    %c0_4 = arith.constant 0 : index
    %6 = vector.load %arg3[%c0_3, %c0_4] : memref<2x1xf32, #tpu.memory_space<vmem>>, vector<2x1xf32>
    tpu.vector_store %arg3[%c0_3, %c0_4], %5 {strides = array<i32>} : memref<2x1xf32, #tpu.memory_space<vmem>>, vector<2x1xf32>,
    return
  }
  func.func @transform_0(%arg0: i32) -> (i32, i32) {
    %c0_i32 = arith.constant 0 : i32
    %c0_i32_0 = arith.constant 0 : i32
    return %arg0, %c0_i32 : i32, i32
  }
  func.func @transform_1(%arg0: i32) -> (i32, i32) {
    %c0_i32 = arith.constant 0 : i32
    %c0_i32_0 = arith.constant 0 : i32
    return %arg0, %c0_i32 : i32, i32
  }
  func.func @transform_2(%arg0: i32) -> (i32, i32) {
    %c0_i32 = arith.constant 0 : i32
    %c0_i32_0 = arith.constant 0 : i32
    return %arg0, %c0_i32 : i32, i32
  }
}

</mosaic_0001>

<bundles_post_ra>
// kernel: tpu_custom_call.1
= control target key start
LH: loop header
LB: loop body
LE: loop exit
PB: predicated region body
PF: predicated region fallthrough
CT: control target
= control target key end

     0   :  { %7 = vsyncpa [#allocation3], 0  ;;  %s182_s0 = inlined_call_operand.hbm [shape: f32[2,1024], index: 0, kind: input, shape index: {}]   ;;  %s183_s1 = inlined_call_operand.hbm [shape: f32[2,1024], index: 1, kind: input, shape index: {}]   ;;  %s184_s2 = inlined_call_operand.vmem [shape: f32[2,1], index: 2, kind: output, shape index: {}]  }
   0x1   :  { %s14_s11 = sshll.u32 %s182_s0, 4  ;;  %s15_s11 = int_to_ptr.hbm [resolvable:$true] %s14_s11 }
   0x2   :  { %8 = vsyncpa [#allocation5], 0  ;;  %s148_s12 = smov [#allocation2]   ;;  %s25_s16 = sshll.u32 %s183_s1, 4  ;;  %s26_s16 = int_to_ptr.hbm [resolvable:$true] %s25_s16 }
   0x3   :  { %s16_s13 = sshll.u32 %s148_s12, 4  ;;  %s149_s17 = smov [#allocation4]   ;;  %s17_s13 = int_to_ptr.vmem [resolvable:$true] %s16_s13 }
   0x4   :  { %19 = dma.hbm_to_vmem [thread:$0]  %s15_s11, 256, %s17_s13, [#allocation3]  }
   0x5   :  { %s27_s18 = sshll.u32 %s149_s17, 4  ;;  %s28_s18 = int_to_ptr.vmem [resolvable:$true] %s27_s18 }
   0x6   :  { %30 = dma.hbm_to_vmem [thread:$0]  %s26_s16, 256, %s28_s18, [#allocation5]  }
   0x7   :  { %144 = dma.done.wait [#allocation3], 256  }
   0x8   :  { %145 = vsyncadd [#allocation3], 4294967040 }
   0x9   :  { %146 = dma.done.wait [#allocation5], 256  }
   0xa   :  { %147 = vsyncadd [#allocation5], 4294967040  ;;  %v39_v0 = vld [vmem:[#allocation4] sm:$0xff]  ;;  %v40_v1 = vld [vmem:[#allocation4 + $0x8] sm:$0xff]  ;;  %vm68_vm0 = vcmask 1041408   ;;  %vm86_vm1 = vcmask 1024  }
   0xb   :  { %v41_v2 = vld [vmem:[#allocation2] sm:$0xff]  ;;  %v42_v3 = vld [vmem:[#allocation2 + $0x8] sm:$0xff] }
   0xc   :  { %v43_v4 = vsub.f32 %v39_v0, %v41_v2  ;;  %v44_v5 = vsub.f32 %v40_v1, %v42_v3 }
   0xe   :  { %v45_v6 = vand.u32 2147483647, %v43_v4  ;;  %v46_v7 = vand.u32 2147483647, %v44_v5 }
  0x10   :  { %49 = vst [vmem:[#allocation1] ss:$4 sm:$0xff] %v45_v6 }
  0x11   :  { %51 = vst [vmem:[#allocation1 + $0x20] ss:$4 sm:$0xff] %v46_v7 }
  0x17   :  { %v52_v8 = vld.sshfl [vmem:[#allocation1] sm:$0xff pattern:$0x73625140]  ;;  %v53_v9 = vld.sshfl [vmem:[#allocation1 + $0x8] sm:$0xff pattern:$0x73625140] }
  0x18   :  { %v54_v10 = vld.sshfl [vmem:[#allocation1 + $0x10] sm:$0xff pattern:$0x73625140]  ;;  %v55_v11 = vld.sshfl [vmem:[#allocation1 + $0x18] sm:$0xff pattern:$0x73625140] }
  0x19   :  { %v69_v12 = vsel %vm68_vm0, %v52_v8, 0.0  ;;  %v70_v13 = vsel %vm68_vm0, %v53_v9, 0.0  ;;  %v72_v14 = vsel %vm68_vm0, %v54_v10, 0.0  ;;  %v56_v15 = vld.sshfl [vmem:[#allocation1 + $0x20] sm:$0xff pattern:$0x73625140] }
  0x1a   :  { %v71_v16 = vadd.f32 %v70_v13, %v69_v12  ;;  %v74_v17 = vsel %vm68_vm0, %v55_v11, 0.0  ;;  %v57_v18 = vld.sshfl [vmem:[#allocation1 + $0x28] sm:$0xff pattern:$0x73625140]  ;;  %v76_v20 = vsel %vm68_vm0, %v56_v15, 0.0 }
  0x1b   :  { %v58_v21 = vld.sshfl [vmem:[#allocation1 + $0x30] sm:$0xff pattern:$0x73625140]  ;;  %v78_v23 = vsel %vm68_vm0, %v57_v18, 0.0 }
  0x1c   :  { %v73_v19 = vadd.f32 %v72_v14, %v71_v16  ;;  %v59_v24 = vld.sshfl [vmem:[#allocation1 + $0x38] sm:$0xff pattern:$0x73625140]  ;;  %v80_v26 = vsel %vm68_vm0, %v58_v21, 0.0 }
  0x1d   :  { %v82_v28 = vsel %vm68_vm0, %v59_v24, 0.0 }
  0x1e   :  { %v75_v22 = vadd.f32 %v74_v17, %v73_v19 }
  0x20   :  { %v77_v25 = vadd.f32 %v76_v20, %v75_v22 }
  0x22   :  { %v79_v27 = vadd.f32 %v78_v23, %v77_v25 }
  0x24   :  { %v81_v29 = vadd.f32 %v80_v26, %v79_v27 }
  0x26   :  { %v83_v30 = vadd.f32 %v82_v28, %v81_v29 }
  0x28   :  { %84 = vadd.xlane.f32.xlu0 %v83_v30 }
  0x9b   :  { %v85_v31 = vpop.xlane.xlu0 %84 }
  0x9c   :  { %87 = vst.msk [vmem:[%s184_s2] sm:$0x3] %vm86_vm1, %v85_v31 }
  0x9d   :  { %92 = vsyncpa [#allocation3], 1 }
  0x9e   :  { %93 = vsyncpa [#allocation5], 1 }

</bundles_post_ra>
